<compile_context>
chip_gen: v6e
topology: v6e:2x2x1
jax: 0.10.0
libtpu: 0.0.40
codegen_flags: <defaults>
</compile_context>

<pallas_src>
import functools

import numpy as np
import jax
import jax.numpy as jnp
from jax import lax
from jax.experimental import pallas as pl
from jax.experimental.pallas import tpu as pltpu

_LANE = 128


def _round_up(n, m):
    return ((n + m - 1) // m) * m


# ---------------------------------------------------------------------------
# Parameter construction (mirrors BinarySearchStep.__init__ exactly)
# ---------------------------------------------------------------------------
def make_binary_search_step_params(slices, j):
    (d_in, w_pos, st_, sym1_, sym2_, pos1_, pos2_, pos3_,
     scr1_, scr2_, scr3_, scr4_, scr5_) = slices
    p = w_pos + j + 2

    w_q = jnp.zeros((p, d_in), jnp.float32)
    b_q = -jnp.ones((p,), jnp.float32)
    for k in range(w_pos):
        w_q = w_q.at[k, pos3_ + k].set(2.0)
    for k in range(j):
        w_q = w_q.at[w_pos + k, scr3_ + k].set(2.0)
    b_q = b_q.at[w_pos + j:].set(1.0)

    w_k = jnp.zeros((p, d_in), jnp.float32)
    b_k = -jnp.ones((p,), jnp.float32)
    for k in range(w_pos):
        w_k = w_k.at[k, pos2_ + k].set(2.0)
    for k in range(j + 1):
        w_k = w_k.at[w_pos + k, pos1_ + k].set(2.0)
    b_k = b_k.at[w_pos + j + 1].set(0.0)

    w_v = jnp.zeros((d_in, d_in), jnp.float32)
    b_v = jnp.zeros((d_in,), jnp.float32).at[scr4_ + 2].set(1.0)

    k_0 = jnp.zeros((p,), jnp.float32).at[w_pos + j + 1].set(float(w_pos + j))
    v_0 = jnp.zeros((d_in,), jnp.float32)

    w_lin = jnp.eye(d_in, dtype=jnp.float32)
    w_lin = w_lin.at[scr3_ + j, scr4_ + 2].set(1.0)
    w_lin = w_lin.at[scr4_ + 2, scr4_ + 2].set(0.0)

    return w_q, b_q, w_k, b_k, w_v, b_v, k_0, v_0, w_lin


# ---------------------------------------------------------------------------
# Structure detection for the fast path
# ---------------------------------------------------------------------------
def _detect_column_edit(w_lin):
    """Return (c_src, c_dst) if w_lin == eye + e_{c_dst} e_{c_src}^T - e_{c_src} e_{c_src}^T."""
    wl = np.asarray(w_lin)
    n = wl.shape[0]
    diff = wl - np.eye(n, dtype=wl.dtype)
    nz = np.argwhere(diff != 0)
    if nz.shape[0] != 2:
        return None
    entries = {tuple(int(i) for i in idx): float(diff[tuple(idx)]) for idx in nz}
    neg = [k for k, v in entries.items() if v == -1.0]
    pos = [k for k, v in entries.items() if v == 1.0]
    if len(neg) != 1 or len(pos) != 1:
        return None
    (r_neg, c_neg), (r_pos, c_pos) = neg[0], pos[0]
    if r_neg == c_neg and c_pos == c_neg and r_pos != r_neg:
        return (c_neg, r_pos)          # (c_src, c_dst)
    return None


# ---------------------------------------------------------------------------
# One-time parameter preparation (pad / pack / fuse; do this once per layer)
# ---------------------------------------------------------------------------
def prepare_binary_search_step(params, *, force_generic=False):
    w_q, b_q, w_k, b_k, w_v, b_v, k_0, v_0, w_lin = params
    p, d_in = w_q.shape
    P = _round_up(p, _LANE)
    D = _round_up(d_in, _LANE)
    W = max(P, D)

    # Fused, lane-padded q/k projection weight: (D, 2P).  Padding is zero.
    wqT = jnp.zeros((D, P), jnp.float32).at[:d_in, :p].set(
        jnp.asarray(w_q, jnp.float32).T)
    wkT = jnp.zeros((D, P), jnp.float32).at[:d_in, :p].set(
        jnp.asarray(w_k, jnp.float32).T)
    wqkT = jnp.concatenate([wqT, wkT], axis=1)

    # Pack the five small vectors into one full-vreg (8, W) block.
    # NOTE: padded bias / k_0 lanes are ZERO (not -1) so padded q/k columns
    # are exactly zero and contribute nothing to the score contractions.
    vecs = jnp.zeros((8, W), jnp.float32)
    vecs = vecs.at[0, :p].set(jnp.asarray(b_q, jnp.float32))
    vecs = vecs.at[1, :p].set(jnp.asarray(b_k, jnp.float32))
    vecs = vecs.at[2, :d_in].set(jnp.asarray(b_v, jnp.float32))
    vecs = vecs.at[3, :p].set(jnp.asarray(k_0, jnp.float32))
    vecs = vecs.at[4, :d_in].set(jnp.asarray(v_0, jnp.float32))

    col_edit = None if force_generic else _detect_column_edit(w_lin)
    wv_zero = (not force_generic) and bool(np.all(np.asarray(w_v) == 0.0))
    structured = wv_zero and (col_edit is not None)

    prep = dict(d_in=int(d_in), p=int(p), P=int(P), D=int(D), W=int(W),
                wqkT=wqkT, vecs=vecs, structured=structured)
    if structured:
        c_src, c_dst = col_edit
        prep["cidx"] = jnp.asarray([c_src, c_dst], jnp.int32)
    else:
        prep["wvT"] = jnp.zeros((D, D), jnp.float32).at[:d_in, :d_in].set(
            jnp.asarray(w_v, jnp.float32).T)
        prep["wlT"] = jnp.zeros((D, D), jnp.float32).at[:d_in, :d_in].set(
            jnp.asarray(w_lin, jnp.float32).T)
    return prep


# ---------------------------------------------------------------------------
# Shared attention front-end (projections + sentinel-aware masked softmax)
# ---------------------------------------------------------------------------
def _attention_weights(x, wqkT, vecs, *, S, P):
    TB = x.shape[0]
    D = x.shape[2]
    R = TB * S
    xf = x.reshape(R, D)

    bq = vecs[0:1, :P]
    bk = vecs[1:2, :P]
    k0 = vecs[3:4, :P]

    # Fused q/k projection: one (R, D) x (D, 2P) MXU pass.
    qk = jnp.dot(xf, wqkT, preferred_element_type=jnp.float32)       # (R, 2P)
    q = qk[:, :P] + bq
    k = qk[:, P:] + bk

    qb = q.reshape(TB, S, P)
    kb = k.reshape(TB, S, P)
    s = jnp.einsum('bqp,bkp->bqk', qb, kb,
                   preferred_element_type=jnp.float32)               # (TB,S,S)
    s0 = lax.dot_general(q, k0, (((1,), (1,)), ((), ())),
                         preferred_element_type=jnp.float32)         # (R,1)
    s0 = s0.reshape(TB, S, 1)

    row = lax.broadcasted_iota(jnp.int32, (TB, S, S), 1)
    col = lax.broadcasted_iota(jnp.int32, (TB, S, S), 2)
    s = jnp.where(col <= row, s, jnp.float32(-1e30))                 # causal

    # Stable softmax over [sentinel, keys] without materializing the concat.
    m = jnp.maximum(jnp.max(s, axis=-1, keepdims=True), s0)          # (TB,S,1)
    e = jnp.exp(s - m)                                               # (TB,S,S)
    e0 = jnp.exp(s0 - m)                                             # (TB,S,1)
    se = jnp.sum(e, axis=-1, keepdims=True)                          # (TB,S,1)
    inv = pl.reciprocal(se + e0, approx=False)                       # (TB,S,1)
    return e, e0, se, inv


# ---------------------------------------------------------------------------
# Fast kernel: exploits w_v == 0 and w_lin == identity + single column edit
# ---------------------------------------------------------------------------
def _bss_structured_kernel(cidx_ref, x_ref, wqkT_ref, vecs_ref, o_ref, *, S, P, D):
    TB = x_ref.shape[0]
    x = x_ref[...]                                                   # (TB,S,D)
    vecs = vecs_ref[...]
    bv = vecs[2:3, :D]
    v0 = vecs[4:5, :D]

    e, e0, se, inv = _attention_weights(x, wqkT_ref[...], vecs, S=S, P=P)

    # w_v == 0  =>  every real value row equals b_v  =>  e @ V == rowsum(e)*b_v.
    attn = (se * bv + e0 * v0) * inv                                 # (TB,S,D)
    y = x + attn

    # Final linear is identity + one column edit -> pure VPU epilogue:
    #   out[:, c_dst] = y[:, c_dst] + y[:, c_src];  out[:, c_src] = 0.
    c_src = cidx_ref[0]
    c_dst = cidx_ref[1]
    colD = lax.broadcasted_iota(jnp.int32, (TB, S, D), 2)
    src = jnp.sum(jnp.where(colD == c_src, y, 0.0), axis=-1, keepdims=True)
    out = jnp.where(colD == c_dst, y + src, y)
    out = jnp.where(colD == c_src, jnp.float32(0.0), out)
    o_ref[...] = out.astype(o_ref.dtype)


# ---------------------------------------------------------------------------
# Generic fallback kernel (arbitrary w_v / w_lin)
# ---------------------------------------------------------------------------
def _bss_generic_kernel(x_ref, wqkT_ref, vecs_ref, wvT_ref, wlT_ref, o_ref,
                        *, S, P, D):
    TB = x_ref.shape[0]
    R = TB * S
    x = x_ref[...]                                                   # (TB,S,D)
    xf = x.reshape(R, D)
    vecs = vecs_ref[...]
    bv = vecs[2:3, :D]
    v0 = vecs[4:5, :D]

    e, e0, se, inv = _attention_weights(x, wqkT_ref[...], vecs, S=S, P=P)

    v = jnp.dot(xf, wvT_ref[...], preferred_element_type=jnp.float32) + bv
    vb = v.reshape(TB, S, D)
    attn = (jnp.einsum('bqk,bkd->bqd', e, vb,
                       preferred_element_type=jnp.float32)
            + e0 * v0) * inv                                         # (TB,S,D)
    y = x + attn
    out = jnp.dot(y.reshape(R, D), wlT_ref[...],
                  preferred_element_type=jnp.float32)
    o_ref[...] = out.reshape(TB, S, D).astype(o_ref.dtype)


# ---------------------------------------------------------------------------
# Wrapper
# ---------------------------------------------------------------------------
def _choose_tb(B, S, target_rows=256):
    tb = max(1, min(B, target_rows // max(S, 1)))
    # Keep >=2 grid steps when possible so both v7x TensorCores get work.
    while tb > 1 and pl.cdiv(B, tb) < 2:
        tb //= 2
    return tb


def binary_search_step(x, prep, *, tb=None, out_padded=False):
    """x: (B, S, d_in) or (B, S, D_padded) f32 -> (B, S, d_in) (or padded) f32."""
    d_in, P, D, W = prep["d_in"], prep["P"], prep["D"], prep["W"]
    B, S = x.shape[0], x.shape[1]

    # Accept already-padded activations so a stack of steps pads/slices once.
    if x.shape[-1] == D:
        xp = x.astype(jnp.float32)
    else:
        assert x.shape[-1] == d_in, (x.shape, d_in, D)
        xp = jnp.pad(x.astype(jnp.float32), ((0, 0), (0, 0), (0, D - d_in)))

    if tb is None:
        tb = _choose_tb(B, S)
    tb = max(1, min(tb, B))
    Bp = _round_up(B, tb)
    if Bp != B:
        xp = jnp.pad(xp, ((0, Bp - B), (0, 0), (0, 0)))
    grid = (Bp // tb,)
    R = Bp * S

    base_flops = 2 * R * D * 2 * P + 2 * Bp * S * S * P + 2 * R * P
    base_bytes = 4 * (2 * Bp * S * D + D * 2 * P + 8 * W)

    if prep["structured"]:
        kernel = functools.partial(_bss_structured_kernel, S=S, P=P, D=D)
        cost = pl.CostEstimate(flops=base_flops,
                               transcendentals=Bp * S * (S + 1),
                               bytes_accessed=base_bytes + 8)
        out = pl.pallas_call(
            kernel,
            out_shape=jax.ShapeDtypeStruct((Bp, S, D), jnp.float32),
            grid_spec=pltpu.PrefetchScalarGridSpec(
                num_scalar_prefetch=1,
                grid=grid,
                in_specs=[
                    pl.BlockSpec((tb, S, D), lambda b, cidx: (b, 0, 0)),   # x
                    pl.BlockSpec((D, 2 * P), lambda b, cidx: (0, 0)),      # wqk^T
                    pl.BlockSpec((8, W), lambda b, cidx: (0, 0)),          # packed vecs
                ],
                out_specs=pl.BlockSpec((tb, S, D), lambda b, cidx: (b, 0, 0)),
            ),
            compiler_params=pltpu.CompilerParams(
                dimension_semantics=("parallel",)),
            cost_estimate=cost,
        )(prep["cidx"], xp, prep["wqkT"], prep["vecs"])
    else:
        kernel = functools.partial(_bss_generic_kernel, S=S, P=P, D=D)
        cost = pl.CostEstimate(
            flops=base_flops + 4 * R * D * D + 2 * Bp * S * S * D,
            transcendentals=Bp * S * (S + 1),
            bytes_accessed=base_bytes + 4 * 2 * D * D)
        out = pl.pallas_call(
            kernel,
            out_shape=jax.ShapeDtypeStruct((Bp, S, D), jnp.float32),
            grid_spec=pltpu.PrefetchScalarGridSpec(
                num_scalar_prefetch=0,
                grid=grid,
                in_specs=[
                    pl.BlockSpec((tb, S, D), lambda b: (b, 0, 0)),         # x
                    pl.BlockSpec((D, 2 * P), lambda b: (0, 0)),            # wqk^T
                    pl.BlockSpec((8, W), lambda b: (0, 0)),                # packed vecs
                    pl.BlockSpec((D, D), lambda b: (0, 0)),                # w_v^T
                    pl.BlockSpec((D, D), lambda b: (0, 0)),                # w_lin^T
                ],
                out_specs=pl.BlockSpec((tb, S, D), lambda b: (b, 0, 0)),
            ),
            compiler_params=pltpu.CompilerParams(
                dimension_semantics=("parallel",)),
            cost_estimate=cost,
        )(xp, prep["wqkT"], prep["vecs"], prep["wvT"], prep["wlT"])

    if Bp != B:
        out = out[:B]
    return out if out_padded else out[..., :d_in]


# ---------------------------------------------------------------------------
# Pure-JAX reference (same assumed attention_forward semantics)
# ---------------------------------------------------------------------------
def binary_search_step_ref(x, params):
    w_q, b_q, w_k, b_k, w_v, b_v, k_0, v_0, w_lin = params
    B, S, d = x.shape
    q = jnp.einsum("bsd,pd->bsp", x, w_q) + b_q
    k = jnp.einsum("bsd,pd->bsp", x, w_k) + b_k
    v = jnp.einsum("bsd,ed->bse", x, w_v) + b_v
    s = jnp.einsum("bqp,bkp->bqk", q, k)                       # (B,S,S)
    s0 = jnp.einsum("bqp,p->bq", q, k_0)[..., None]            # (B,S,1)
    row = jnp.arange(S)[:, None]
    col = jnp.arange(S)[None, :]
    s = jnp.where(col <= row, s, jnp.float32(-1e30))
    scores = jnp.concatenate([s0, s], axis=-1)                 # (B,S,S+1)
    a = jax.nn.softmax(scores, axis=-1)
    v_full = jnp.concatenate([jnp.broadcast_to(v_0, (B, 1, d)), v], axis=1)
    attn = jnp.einsum("bqk,bkd->bqd", a, v_full)
    y = x + attn
    return jnp.einsum("bsd,od->bso", y, w_lin)


if __name__ == "__main__":
    # Small, internally-consistent slice layout: d_in=32, w_pos=4, j=2.
    d_in, w_pos, j = 32, 4, 2
    slices = (d_in, w_pos,
              0,    # st_
              1,    # sym1_
              2,    # sym2_
              4,    # pos1_   (pos1_ + j   < d_in)
              8,    # pos2_   (pos2_ + w_pos - 1 < d_in)
              12,   # pos3_
              16,   # scr1_
              18,   # scr2_
              20,   # scr3_   (scr3_ + j   < d_in)
              24,   # scr4_   (scr4_ + 2   < d_in)
              28)   # scr5_

    params = make_binary_search_step_params(slices, j)

    B, S = 4, 8
    key = jax.random.PRNGKey(0)
    x = jax.random.normal(key, (B, S, d_in), dtype=jnp.float32)

    ref = binary_search_step_ref(x, params)

    # Structured fast path (matmul-free value path and epilogue).
    prep_fast = prepare_binary_search_step(params)
    assert prep_fast["structured"], "expected WCM-structured parameters"
    out_fast = jax.block_until_ready(binary_search_step(x, prep_fast))
    assert out_fast.shape == (B, S, d_in), out_fast.shape
    err_fast = float(jnp.max(jnp.abs(out_fast - ref)))
    assert jnp.allclose(out_fast, ref, atol=1e-4, rtol=1e-4), err_fast

    # Generic fallback path (arbitrary w_v / w_lin).
    prep_gen = prepare_binary_search_step(params, force_generic=True)
    out_gen = jax.block_until_ready(binary_search_step(x, prep_gen))
    err_gen = float(jnp.max(jnp.abs(out_gen - ref)))
    assert jnp.allclose(out_gen, ref, atol=1e-4, rtol=1e-4), err_gen

    print("KERNEL_OK")
</pallas_src>

<mosaic_0001>
module attributes {stable_mosaic.version = 11 : i64} {
  func.func @_bss_structured_kernel(%arg0: i32, %arg1: memref<2xi32, #tpu.memory_space<smem>>, %arg2: memref<2x8x128xf32, #tpu.memory_space<vmem>>, %arg3: memref<128x256xf32, #tpu.memory_space<vmem>>, %arg4: memref<8x128xf32, #tpu.memory_space<vmem>>, %arg5: memref<2x8x128xf32, #tpu.memory_space<vmem>>) attributes {dimension_semantics = [#tpu.dimension_semantics<parallel>], iteration_bounds = array<i64: 2>, scalar_prefetch = 1 : i64, scratch_operands = 0 : i64, tpu.core_type = #tpu.core_type<tc>, window_params = [{transform_indices = @transform_0, window_bounds = array<i64: 2, 8, 128>}, {pipeline_mode = #tpu.pipeline_mode<synchronous>, transform_indices = @transform_1, window_bounds = array<i64: 128, 256>}, {pipeline_mode = #tpu.pipeline_mode<synchronous>, transform_indices = @transform_2, window_bounds = array<i64: 8, 128>}, {transform_indices = @transform_3, window_bounds = array<i64: 2, 8, 128>}]} {
    %c0 = arith.constant 0 : index
    %c0_0 = arith.constant 0 : index
    %c0_1 = arith.constant 0 : index
    %0 = vector.load %arg2[%c0, %c0_0, %c0_1] : memref<2x8x128xf32, #tpu.memory_space<vmem>>, vector<2x8x128xf32>
    %c0_2 = arith.constant 0 : index
    %c0_3 = arith.constant 0 : index
    %1 = vector.load %arg4[%c0_2, %c0_3] : memref<8x128xf32, #tpu.memory_space<vmem>>, vector<8x128xf32>
    %2 = vector.extract_strided_slice %1 {offsets = [2, 0], sizes = [1, 128], strides = [1, 1]} : vector<8x128xf32> to vector<1x128xf32>
    %3 = vector.extract_strided_slice %1 {offsets = [4, 0], sizes = [1, 128], strides = [1, 1]} : vector<8x128xf32> to vector<1x128xf32>
    %c0_4 = arith.constant 0 : index
    %c0_5 = arith.constant 0 : index
    %4 = vector.load %arg3[%c0_4, %c0_5] : memref<128x256xf32, #tpu.memory_space<vmem>>, vector<128x256xf32>
    %5 = vector.shape_cast %0 : vector<2x8x128xf32> to vector<16x128xf32>
    %6 = vector.extract_strided_slice %1 {offsets = [0, 0], sizes = [1, 128], strides = [1, 1]} : vector<8x128xf32> to vector<1x128xf32>
    %7 = vector.extract_strided_slice %1 {offsets = [1, 0], sizes = [1, 128], strides = [1, 1]} : vector<8x128xf32> to vector<1x128xf32>
    %8 = vector.extract_strided_slice %1 {offsets = [3, 0], sizes = [1, 128], strides = [1, 1]} : vector<8x128xf32> to vector<1x128xf32>
    %cst = arith.constant dense<0.000000e+00> : vector<16x256xf32>
    %9 = tpu.matmul %5, %4, %cst {dimension_numbers = #tpu.dot_dimension_numbers<[1], [0], [0], [1], [0, 0, 1, 1], [], []>} : vector<16x128xf32>, vector<128x256xf32>, vector<16x256xf32> -> vector<16x256xf32>
    %10 = vector.extract_strided_slice %9 {offsets = [0, 0], sizes = [16, 128], strides = [1, 1]} : vector<16x256xf32> to vector<16x128xf32>
    %11 = vector.broadcast %6 : vector<1x128xf32> to vector<16x128xf32>
    %12 = arith.addf %10, %11 : vector<16x128xf32>
    %13 = vector.extract_strided_slice %9 {offsets = [0, 128], sizes = [16, 128], strides = [1, 1]} : vector<16x256xf32> to vector<16x128xf32>
    %14 = vector.broadcast %7 : vector<1x128xf32> to vector<16x128xf32>
    %15 = arith.addf %13, %14 : vector<16x128xf32>
    %16 = vector.shape_cast %12 : vector<16x128xf32> to vector<2x8x128xf32>
    %17 = vector.shape_cast %15 : vector<16x128xf32> to vector<2x8x128xf32>
    "tpu.trace_start"() <{level = 10 : i32, message = "bqp,bkp->bqk"}> : () -> ()
    %cst_6 = arith.constant dense<0.000000e+00> : vector<2x8x8xf32>
    %18 = tpu.matmul %16, %17, %cst_6 {dimension_numbers = #tpu.dot_dimension_numbers<[2], [2], [1], [1], [0, 0, 0, 1, 1, 1], [0], [0]>} : vector<2x8x128xf32>, vector<2x8x128xf32>, vector<2x8x8xf32> -> vector<2x8x8xf32>
    "tpu.trace_stop"() : () -> ()
    %cst_7 = arith.constant dense<0.000000e+00> : vector<16x1xf32>
    %19 = tpu.matmul %12, %8, %cst_7 {dimension_numbers = #tpu.dot_dimension_numbers<[1], [1], [0], [0], [0, 0, 1, 0], [], []>} : vector<16x128xf32>, vector<1x128xf32>, vector<16x1xf32> -> vector<16x1xf32>
    %20 = vector.shape_cast %19 : vector<16x1xf32> to vector<2x8x1xf32>
    %21 = tpu.iota {dimensions = array<i32: 1>} : vector<2x8x8xi32>
    %22 = tpu.iota {dimensions = array<i32: 2>} : vector<2x8x8xi32>
    %23 = arith.cmpi sle, %22, %21 : vector<2x8x8xi32>
    %cst_8 = arith.constant -1.000000e+30 : f32
    %24 = vector.broadcast %cst_8 : f32 to vector<2x8x8xf32>
    %25 = arith.select %23, %18, %24 : vector<2x8x8xi1>, vector<2x8x8xf32>
    %cst_9 = arith.constant dense<0xFF800000> : vector<2x8xf32>
    %26 = vector.multi_reduction <maximumf>, %25, %cst_9 [2] : vector<2x8x8xf32> to vector<2x8xf32>
    %27 = vector.shape_cast %26 : vector<2x8xf32> to vector<2x8x1xf32>
    %28 = arith.maximumf %27, %20 : vector<2x8x1xf32>
    %29 = vector.broadcast %28 : vector<2x8x1xf32> to vector<2x8x8xf32>
    %30 = arith.subf %25, %29 : vector<2x8x8xf32>
    %31 = math.exp %30 : vector<2x8x8xf32>
    %32 = arith.subf %20, %28 : vector<2x8x1xf32>
    %33 = math.exp %32 : vector<2x8x1xf32>
    %cst_10 = arith.constant dense<0.000000e+00> : vector<2x8xf32>
    %34 = vector.multi_reduction <add>, %31, %cst_10 [2] : vector<2x8x8xf32> to vector<2x8xf32>
    %35 = vector.shape_cast %34 : vector<2x8xf32> to vector<2x8x1xf32>
    %36 = arith.addf %35, %33 : vector<2x8x1xf32>
    %37 = tpu.reciprocal %36 : vector<2x8x1xf32> -> vector<2x8x1xf32>
    %38 = vector.shape_cast %2 : vector<1x128xf32> to vector<1x1x128xf32>
    %39 = vector.broadcast %35 : vector<2x8x1xf32> to vector<2x8x128xf32>
    %40 = vector.broadcast %38 : vector<1x1x128xf32> to vector<2x8x128xf32>
    %41 = arith.mulf %39, %40 : vector<2x8x128xf32>
    %42 = vector.shape_cast %3 : vector<1x128xf32> to vector<1x1x128xf32>
    %43 = vector.broadcast %33 : vector<2x8x1xf32> to vector<2x8x128xf32>
    %44 = vector.broadcast %42 : vector<1x1x128xf32> to vector<2x8x128xf32>
    %45 = arith.mulf %43, %44 : vector<2x8x128xf32>
    %46 = arith.addf %41, %45 : vector<2x8x128xf32>
    %47 = vector.broadcast %37 : vector<2x8x1xf32> to vector<2x8x128xf32>
    %48 = arith.mulf %46, %47 : vector<2x8x128xf32>
    %49 = arith.addf %0, %48 : vector<2x8x128xf32>
    %c0_11 = arith.constant 0 : index
    %50 = memref.load %arg1[%c0_11] : memref<2xi32, #tpu.memory_space<smem>>
    %c1 = arith.constant 1 : index
    %51 = memref.load %arg1[%c1] : memref<2xi32, #tpu.memory_space<smem>>
    %52 = tpu.iota {dimensions = array<i32: 2>} : vector<2x8x128xi32>
    %53 = vector.broadcast %50 : i32 to vector<2x8x128xi32>
    %54 = arith.cmpi eq, %52, %53 : vector<2x8x128xi32>
    %cst_12 = arith.constant 0.000000e+00 : f32
    %55 = vector.broadcast %cst_12 : f32 to vector<2x8x128xf32>
    %56 = arith.select %54, %49, %55 : vector<2x8x128xi1>, vector<2x8x128xf32>
    %cst_13 = arith.constant dense<0.000000e+00> : vector<2x8xf32>
    %57 = vector.multi_reduction <add>, %56, %cst_13 [2] : vector<2x8x128xf32> to vector<2x8xf32>
    %58 = vector.shape_cast %57 : vector<2x8xf32> to vector<2x8x1xf32>
    %59 = vector.broadcast %51 : i32 to vector<2x8x128xi32>
    %60 = arith.cmpi eq, %52, %59 : vector<2x8x128xi32>
    %61 = vector.broadcast %58 : vector<2x8x1xf32> to vector<2x8x128xf32>
    %62 = arith.addf %49, %61 : vector<2x8x128xf32>
    %63 = arith.select %60, %62, %49 : vector<2x8x128xi1>, vector<2x8x128xf32>
    %64 = vector.broadcast %50 : i32 to vector<2x8x128xi32>
    %65 = arith.cmpi eq, %52, %64 : vector<2x8x128xi32>
    %cst_14 = arith.constant 0.000000e+00 : f32
    %66 = vector.broadcast %cst_14 : f32 to vector<2x8x128xf32>
    %67 = arith.select %65, %66, %63 : vector<2x8x128xi1>, vector<2x8x128xf32>
    %c0_15 = arith.constant 0 : index
    %c0_16 = arith.constant 0 : index
    %c0_17 = arith.constant 0 : index
    %68 = vector.load %arg5[%c0_15, %c0_16, %c0_17] : memref<2x8x128xf32, #tpu.memory_space<vmem>>, vector<2x8x128xf32>
    tpu.vector_store %arg5[%c0_15, %c0_16, %c0_17], %67 {strides = array<i32>} : memref<2x8x128xf32, #tpu.memory_space<vmem>>, vector<2x8x128xf32>,
    return
  }
  func.func @transform_0(%arg0: i32, %arg1: memref<2xi32, #tpu.memory_space<smem>>) -> (i32, i32, i32) {
    %c0_i32 = arith.constant 0 : i32
    %c0_i32_0 = arith.constant 0 : i32
    %c0_i32_1 = arith.constant 0 : i32
    return %arg0, %c0_i32, %c0_i32_0 : i32, i32, i32
  }
  func.func @transform_1(%arg0: i32, %arg1: memref<2xi32, #tpu.memory_space<smem>>) -> (i32, i32) {
    %c0_i32 = arith.constant 0 : i32
    %c0_i32_0 = arith.constant 0 : i32
    %c0_i32_1 = arith.constant 0 : i32
    return %c0_i32, %c0_i32_0 : i32, i32
  }
  func.func @transform_2(%arg0: i32, %arg1: memref<2xi32, #tpu.memory_space<smem>>) -> (i32, i32) {
    %c0_i32 = arith.constant 0 : i32
    %c0_i32_0 = arith.constant 0 : i32
    %c0_i32_1 = arith.constant 0 : i32
    return %c0_i32, %c0_i32_0 : i32, i32
  }
  func.func @transform_3(%arg0: i32, %arg1: memref<2xi32, #tpu.memory_space<smem>>) -> (i32, i32, i32) {
    %c0_i32 = arith.constant 0 : i32
    %c0_i32_0 = arith.constant 0 : i32
    %c0_i32_1 = arith.constant 0 : i32
    return %arg0, %c0_i32, %c0_i32_0 : i32, i32, i32
  }
}

</mosaic_0001>

<bundles_post_ra>
// kernel: tpu_custom_call.1
= control target key start
LH: loop header
LB: loop body
LE: loop exit
PB: predicated region body
PF: predicated region fallthrough
CT: control target
= control target key end

     0   :  { %s962_s15 = smov [#allocation3]   ;;  %s1251_s0 = inlined_call_operand.hbm [shape: s32[2], index: 0, kind: input, shape index: {}]   ;;  %s1252_s1 = inlined_call_operand.hbm [shape: f32[4,8,128], index: 1, kind: input, shape index: {}]   ;;  %s1253_s2 = inlined_call_operand.hbm [shape: f32[128,256], index: 2, kind: input, shape index: {}]   ;;  %s1254_s3 = inlined_call_operand.hbm [shape: f32[8,128], index: 3, kind: input, shape index: {}]   ;;  %s1255_s4 = inlined_call_operand.hbm [shape: f32[4,8,128], index: 4, kind: output, shape index: {}]  }
   0x1   :  { %10 = dma.hbm_to_smem %s1251_s0, 16, %s962_s15, [#allocation2] }
   0x2   :  { %932 = dma.done.wait [#allocation2], 16 }
   0x3   :  { %933 = vsyncadd [#allocation2], 4294967280 }
   0x4   :  { %12 = sfence }
   0x5   :  { %13 = vsyncpa [#allocation5], 0 }
   0x6   :  { %15 = vsyncpa [#allocation5 + $0x1], 0 }
   0x7   :  { %16 = vsyncpa [#allocation8], 0 }
   0x8   :  { %17 = vsyncpa [#allocation6], 0 }
   0x9   :  { %19 = vsyncpa [#allocation6 + $0x1], 0  ;;  %s1003_s18 = smov 0   ;;  %s1005_s19 = smov 0  }
   0xa   :  { %s1007_s20 = smov 0   ;;  %s1009_s21 = smov 0  }
   0xb LB: > { %s1024_s0 = sadd.s32 4294967295, %s960_s21   ;;  %s679_s22 = sadd.s32 4294967294, %s960_s21   ;;  %s960_s21 = sphi %s1009_s21, %s1279_s21   ;;  %s956_s20 = sphi %s1007_s20, %s1278_s20   ;;  %s952_s19 = sphi %s1005_s19, %s1277_s19   ;;  %s948_s18 = sphi %s1003_s18, %s1276_s18  }
   0xc   : > { %p45_p0 = scmp.ne.s32.totalorder %s952_s19, %s948_s18  ;;  %p1256_p1 = scmp.eq.s32.totalorder %s1024_s0, 0 }
   0xd   : > { %p117_p3 = scmp.eq.s32.totalorder %s679_s22, 1  ;;  %p680_p5 = scmp.ge.s32.totalorder %s960_s21, 1 }
   0xe   : > { %p1033_p4 = por %p1256_p1, %p45_p0  ;;  %p124_p7 = scmp.lt.s32.totalorder %s960_s21, 3 }
   0xf   : > { %p1038_p6 = por %p117_p3, %p45_p0  ;;  %s963_s26 = smov [#allocation7]  }
  0x10   : > { %s1260_s23 = scalar_select %p1033_p4, 1, 0 }
  0x11   : > { %s1261_s24 = scalar_select %p1038_p6, 1, 0 }
  0x12   : > { %p1043_p8 = pnand %p680_p5, %p124_p7  ;;  %s136_s27 = sshll.u32 %s963_s26, 4  ;;  %s137_s27 = int_to_ptr.vmem [resolvable:$true] %s136_s27 }
  0x13   : > { %s964_s29 = smov [#allocation9]   ;;  %s821_s5 = scalar_lea.vmem %s137_s27, 4096 }
  0x14   : > { %s1262_s25 = scalar_select %p1043_p8, 1, 0 }
  0x15   : > { %p726_p9 = pneg %p1043_p8  ;;  %s150_s30 = sshll.u32 %s964_s29, 4  ;;  %s151_s30 = int_to_ptr.vmem [resolvable:$true] %s150_s30 }
  0x16   : > { %p822_p13 = scmp.ne.s32.totalorder %s137_s27, %s821_s5  ;;  %p829_p5 = scmp.lt.s32.totalorder %s137_s27, %s137_s27 }
  0x17   : > { %p1052_p11 = pnand %p726_p9, %p1256_p1  ;;  %p830_p7 = scmp.lt.s32.totalorder %s821_s5, %s821_s5 }
  0x19   : > { %p812_p12 = pneg %p1052_p11  ;;  %p831_p10 = por %p830_p7, %p829_p5 }
  0x1b   : > { %p824_p0 = pnand %p822_p13, %p812_p12 }
  0x1d   : > { %p825_p3 = pneg %p824_p0 }
  0x1f   : > { %p832_p9 = pnand %p831_p10, %p825_p3 }
  0x21   : > { %835 = shalt.err (!%p832_p9)
}
  0x22   : > { %s965_s6 = smov 256   ;;  %s966_s7 = smov 16  }
  0x23   : > { %729 = dma.hbm_to_vmem [thread:$0]  (!%p1052_p11), %s1253_s2, 4096, %s137_s27, [#allocation8], %s965_s6, %s965_s6, %s966_s7  }
  0x24   : > { %s847_s10 = scalar_lea.vmem %s151_s30, 128  ;;  %p855_p2 = scmp.lt.s32.totalorder %s151_s30, %s151_s30 }
  0x25   : > { %p848_p1 = scmp.ne.s32.totalorder %s151_s30, %s847_s10  ;;  %p856_p6 = scmp.lt.s32.totalorder %s847_s10, %s847_s10 }
  0x27   : > { %p850_p13 = pnand %p848_p1, %p812_p12  ;;  %p857_p5 = por %p856_p6, %p855_p2 }
  0x29   : > { %p851_p0 = pneg %p850_p13 }
  0x2b   : > { %p858_p10 = pnand %p857_p5, %p851_p0 }
  0x2d   : > { %861 = shalt.err (!%p858_p10)
}
  0x2e   : > { %732 = dma.hbm_to_vmem [thread:$0]  (!%p1052_p11), %s1254_s3, 128, %s151_s30, [#allocation8]  }
  0x2f   : > { %s1075_s13 = sadd.s32 1, %s960_s21   ;;  %s32_s14 = sadd.s32 1, %s956_s20 }
  0x30   : > { %s29_s15 = ssub.s32 %s960_s21, %s1075_s13  ;;  %p39_p1 = scmp.ne.s32.totalorder %s956_s20, %s952_s19 }
  0x31   : > { %p30_p2 = scmp.eq.s32.totalorder %s29_s15, 0  ;;  %p40_p6 = scmp.eq.s32.totalorder %s960_s21, 0 }
  0x32   : > { %p1264_p12 = scmp.eq.s32.totalorder %s1024_s0, 1  ;;  %p743_p7 = scmp.lt.s32.totalorder %s960_s21, 2 }
  0x33   : > { %s1091_s17 = scalar_select %p30_p2, %s956_s20, %s32_s14  }
  0x34   : > { %p1085_p3 = por %p1264_p12, %p39_p1  ;;  %p41_p9 = por %p40_p6, %p39_p1 }
  0x35   : > { %s161_s22 = sand.u32 1, %s956_s20   ;;  %s698_s27 = sshll.u32 %s960_s21, 8 }
  0x36   : > { %s1265_s16 = scalar_select %p1085_p3, 1, 0 }
  0x37   : > { %s684_s26 = sshll.u32 %s161_s22, 4  ;;  %s1098_s30 = scalar_lea.hbm %s1252_s1, %s698_s27 }
  0x38   : > { %s165_s5 = scalar_lea.vmem [#allocation4], %s684_s26  ;;  %p1102_p11 = pnand %p743_p7, %p41_p9 }
  0x39   : > { %s172_s6 = sshll.u32 %s165_s5, 4  ;;  %s1106_s8 = scalar_lea.sflag [#allocation5], %s161_s22  ;;  %s1100_s6 = int_to_ptr.vmem [resolvable:$true] %s172_s6 }
  0x3a   : > { %s862_s9 = scalar_lea.hbm %s1098_s30, 256  ;;  %p864_p0 = pneg %p1102_p11 }
  0x3b   : > { %p863_p13 = scmp.ne.s32.totalorder %s1098_s30, %s862_s9  ;;  %s867_s12 = scalar_lea.hbm %s1252_s1, 512 }
  0x3c   : > { %p868_p1 = scmp.lt.s32.totalorder %s1098_s30, %s1252_s1  ;;  %p869_p2 = scmp.lt.s32.totalorder %s867_s12, %s862_s9 }
  0x3d   : > { %p865_p5 = pnand %p864_p0, %p863_p13 }
  0x3e   : > { %p870_p6 = por %p869_p2, %p868_p1 }
  0x3f   : > { %p866_p10 = pneg %p865_p5 }
  0x41   : > { %p871_p12 = pnand %p870_p6, %p866_p10 }
  0x43   : > { %874 = shalt.err (!%p871_p12)
}
  0x44   : > { %s875_s22 = scalar_lea.vmem %s1100_s6, 256  ;;  %s967_s26 = smov [#allocation4]  }
  0x45   : > { %p876_p7 = scmp.ne.s32.totalorder %s1100_s6, %s875_s22  ;;  %s880_s27 = sshll.u32 %s967_s26, 4  ;;  %s881_s27 = int_to_ptr.vmem [resolvable:$false] %s880_s27 }
  0x46   : > { %s882_s28 = scalar_lea.vmem %s881_s27, 512  ;;  %p883_p5 = scmp.lt.s32.totalorder %s1100_s6, %s881_s27 }
  0x47   : > { %p878_p9 = pnand %p876_p7, %p864_p0  ;;  %p884_p3 = scmp.lt.s32.totalorder %s882_s28, %s875_s22 }
  0x49   : > { %p879_p13 = pneg %p878_p9  ;;  %p885_p4 = por %p884_p3, %p883_p5 }
  0x4b   : > { %p886_p8 = pnand %p885_p4, %p879_p13 }
  0x4d   : > { %889 = shalt.err (!%p886_p8)
}
  0x4e   : > { %s968_s29 = smov 128   ;;  %s969_s5 = smov 8  }
  0x4f   : > { %736 = dma.hbm_to_vmem [thread:$0]  (!%p1102_p11), %s1098_s30, 256, %s1100_s6, %s1106_s8, %s968_s29, %s968_s29, %s969_s5  }
  0x50   : > { %p1267_p0 = scmp.ne.s32.totalorder %s1262_s25, 0 }
  0x51   : > { %s1130_s9 = sand.u32 (!%p1267_p0), 1, %s952_s19   ;;  %p1268_p4 = scmp.ne.s32.totalorder (!%p1267_p0), %s1260_s23, 0 }
  0x52   : > { %184 = sbr.rel (%p1267_p0) target bundleno = 998 (0x3e6), region = 32  ;;  %s688_s10 = sshll.u32 (!%p1267_p0), %s1130_s9, 4 }
  0x53   : > { %s187_s11 = scalar_lea.sflag (!%p1267_p0), [#allocation5], %s1130_s9  ;;  %s1136_s12 = scalar_lea.vmem (!%p1267_p0), [#allocation4], %s688_s10 }
  0x57   : > { %935 = dma.done.wait (%p1268_p4), %s187_s11, 256  }
  0x58   : > { %937 = vsyncadd (%p1268_p4), %s187_s11, 4294967040  ;;  %p1269_p8 = scmp.eq.s32.totalorder %s1024_s0, 0 }
  0x5a   : > { %939 = dma.done.wait (%p1269_p8), [#allocation8], 4224   ;;  %p1270_p3 = pmov %p1269_p8 }
  0x5b   : > { %v970_v0 = vmov 0.0   ;;  %v257_v1 = vld [vmem:[#allocation7 + $0xf8] sm:$0xff]  ;;  %v256_v2 = vld [vmem:[#allocation7 + $0xf0] sm:$0xff]  ;;  %v255_v3 = vld [vmem:[#allocation7 + $0xe8] sm:$0xff]  ;;  %vm971_vm0 = vmmov 0   ;;  %v335_v35 = vlaneseq  ;;  %vm504_vm2 = vcmask 64512  }
  0x5c   : > { %941 = vsyncadd (%p1270_p3), [#allocation8], 4294963072  ;;  %322 = vmatprep.mubr.f32.mxu0 %v970_v0  ;;  %704 = vmatprep.subr.mxu1 %v970_v0  ;;  %v254_v4 = vld [vmem:[#allocation7 + $0xe0] sm:$0xff]  ;;  %v253_v5 = vld [vmem:[#allocation7 + $0xd8] sm:$0xff]  ;;  %s553_s23 = sld [smem:[#allocation3]]  ;;  %s220_s30 = scalar_lea.vmem [#allocation10], %s688_s10 }
  0x5d   : > { %258 = vmatprep.subr.mxu0 %v257_v1  ;;  %v252_v6 = vld [vmem:[#allocation7 + $0xd0] sm:$0xff]  ;;  %v251_v7 = vld [vmem:[#allocation7 + $0xc8] sm:$0xff]  ;;  %v250_v8 = vld [vmem:[#allocation7 + $0xc0] sm:$0xff]  ;;  %706 = vmatprep.mubr.msk.f32.mxu1 %vm971_vm0, %v970_v0  ;;  %v1159_v36 = vshrl.u32 %v335_v35, 7  ;;  %v1172_v54 = vand.u32 127, %v335_v35  ;;  %s692_s25 = sld [smem:[#allocation3 + $0x1]] }
  0x5e   : > { %259 = vmatpush1.msra.mxu0 %v256_v2  ;;  %v249_v9 = vld [vmem:[#allocation7 + $0xb8] sm:$0xff]  ;;  %v248_v10 = vld [vmem:[#allocation7 + $0xb0] sm:$0xff]  ;;  %v247_v11 = vld [vmem:[#allocation7 + $0xa8] sm:$0xff]  ;;  %s587_s6 = sshll.u32 %s220_s30, 4  ;;  %s699_s7 = sshll.u32 %s1024_s0, 8  ;;  %s1201_s6 = int_to_ptr.vmem [resolvable:$true] %s587_s6 }
  0x5f   : > { %260 = vmatprep.subr.mxu0 %v255_v3  ;;  %v246_v12 = vld [vmem:[#allocation7 + $0xa0] sm:$0xff]  ;;  %v245_v13 = vld [vmem:[#allocation7 + $0x98] sm:$0xff]  ;;  %v244_v14 = vld [vmem:[#allocation7 + $0x90] sm:$0xff]  ;;  %v337_v37 = vsub.s32 0, %v1159_v36  ;;  %v343_v39 = vsub.s32 1, %v1159_v36  ;;  %v489_v40 = vsub.s32 3, %v1159_v36  ;;  %vm501_vm1 = vcmp.le.s32.totalorder %v1172_v54, %v1159_v36  ;;  %s1206_s15 = scalar_lea.hbm %s1255_s4, %s699_s7 }
  0x60   : > { %261 = vmatpush1.msra.mxu0 %v254_v4  ;;  %v243_v15 = vld [vmem:[#allocation7 + $0x88] sm:$0xff]  ;;  %v242_v16 = vld [vmem:[#allocation7 + $0x80] sm:$0xff]  ;;  %v241_v17 = vld [vmem:[#allocation7 + $0x78] sm:$0xff]  ;;  %s574_s0 = scalar_lea.sflag [#allocation6], %s1130_s9  ;;  %s890_s22 = scalar_lea.vmem %s1201_s6, 256 }
  0x61   : > { %262 = vmatprep.subr.mxu0 %v253_v5  ;;  %v240_v18 = vld [vmem:[#allocation7 + $0x70] sm:$0xff]  ;;  %v239_v19 = vld [vmem:[#allocation7 + $0x68] sm:$0xff]  ;;  %v238_v20 = vld [vmem:[#allocation7 + $0x60] sm:$0xff]  ;;  %p891_p11 = scmp.ne.s32.totalorder %s1201_s6, %s890_s22  ;;  %p1273_p10 = scmp.ne.s32.totalorder %s1265_s16, 0 }
  0x62   : > { %263 = vmatpush1.msra.mxu0 %v252_v6  ;;  %v237_v21 = vld [vmem:[#allocation7 + $0x58] sm:$0xff]  ;;  %v236_v22 = vld [vmem:[#allocation7 + $0x50] sm:$0xff]  ;;  %v235_v23 = vld [vmem:[#allocation7 + $0x48] sm:$0xff]  ;;  %s972_s26 = smov [#allocation10]  }
  0x63   : > { %264 = vmatprep.subr.mxu0 %v251_v7  ;;  %v234_v24 = vld [vmem:[#allocation7 + $0x40] sm:$0xff]  ;;  %v233_v25 = vld [vmem:[#allocation7 + $0x38] sm:$0xff]  ;;  %v232_v26 = vld [vmem:[#allocation7 + $0x30] sm:$0xff]  ;;  %p892_p1 = pnand %p891_p11, %p1273_p10  ;;  %s894_s27 = sshll.u32 %s972_s26, 4  ;;  %s895_s27 = int_to_ptr.vmem [resolvable:$false] %s894_s27 }
  0x64   : > { %265 = vmatpush1.msra.mxu0 %v250_v8  ;;  %v231_v27 = vld [vmem:[#allocation7 + $0x28] sm:$0xff]  ;;  %v230_v28 = vld [vmem:[#allocation7 + $0x20] sm:$0xff]  ;;  %v229_v29 = vld [vmem:[#allocation7 + $0x18] sm:$0xff]  ;;  %s896_s28 = scalar_lea.vmem %s895_s27, 512  ;;  %p897_p6 = scmp.lt.s32.totalorder %s1201_s6, %s895_s27 }
  0x65   : > { %266 = vmatprep.subr.mxu0 %v249_v9  ;;  %v228_v30 = vld [vmem:[#allocation7 + $0x10] sm:$0xff]  ;;  %v227_v31 = vld [vmem:[#allocation7 + $0x8] sm:$0xff]  ;;  %v226_v32 = vld [vmem:[#allocation7] sm:$0xff]  ;;  %p893_p2 = pneg %p892_p1  ;;  %p898_p12 = scmp.lt.s32.totalorder %s896_s28, %s890_s22 }
  0x66   : > { %267 = vmatpush1.msra.mxu0 %v248_v10  ;;  %v1149_v33 = vld [vmem:[%s1136_s12] sm:$0xff]  ;;  %v1154_v34 = vld [vmem:[%s1136_s12 + $0x8] sm:$0xff] }
  0x67   : > { %268 = vmatprep.subr.mxu0 %v247_v11  ;;  %v1162_v38 = vld [vmem:[#allocation9] sm:$0xff]  ;;  %p899_p7 = por %p898_p12, %p897_p6 }
  0x68   : > { %269 = vmatpush1.msra.mxu0 %v246_v12  ;;  %v338_v41 = vrot.slane %v1162_v38, %v337_v37  ;;  %v344_v42 = vrot.slane %v1162_v38, %v343_v39  ;;  %v490_v43 = vrot.slane %v1162_v38, %v489_v40 }
  0x69   : > { %270 = vmatprep.subr.mxu0 %v245_v13  ;;  %p900_p9 = pnand %p899_p7, %p893_p2 }
  0x6a   : > { %271 = vmatpush1.msra.mxu0 %v244_v14 }
  0x6b   : > { %272 = vmatprep.subr.mxu0 %v243_v15 }
  0x6c   : > { %273 = vmatpush1.msra.mxu0 %v242_v16 }
  0x6d   : > { %274 = vmatprep.subr.mxu0 %v241_v17 }
  0x6e   : > { %275 = vmatpush1.msra.mxu0 %v240_v18 }
  0x6f   : > { %276 = vmatprep.subr.mxu0 %v239_v19 }
  0x70   : > { %277 = vmatpush1.msra.mxu0 %v238_v20  ;;  %v537_v20 = vsub.s32 2, %v1159_v36 }
  0x71   : > { %278 = vmatprep.subr.mxu0 %v237_v21 }
  0x72   : > { %279 = vmatpush1.msra.mxu0 %v236_v22 }
  0x73   : > { %280 = vmatprep.subr.mxu0 %v235_v23  ;;  %v543_v23 = vsub.s32 4, %v1159_v36 }
  0x74   : > { %281 = vmatpush1.msra.mxu0 %v234_v24 }
  0x75   : > { %282 = vmatprep.subr.mxu0 %v233_v25  ;;  %v538_v25 = vrot.slane %v1162_v38, %v537_v20 }
  0x76   : > { %283 = vmatpush1.msra.mxu0 %v232_v26  ;;  %v544_v26 = vrot.slane %v1162_v38, %v543_v23 }
  0x77   : > { %284 = vmatprep.subr.mxu0 %v231_v27 }
  0x78   : > { %285 = vmatpush1.msra.mxu0 %v230_v28 }
  0x79   : > { %286 = vmatprep.subr.mxu0 %v229_v29 }
  0x7a   : > { %287 = vmatpush1.msra.mxu0 %v228_v30 }
  0x7b   : > { %288 = vmatprep.subr.mxu0 %v227_v31  ;;  %v555_v31 = vstv %s553_s23 }
  0x7c   : > { %289 = vmatpush1.msra.mxu0 %v226_v32  ;;  %vm1185_vm3 = vcmp.eq.s32.totalorder %v1172_v54, %v555_v31 }
  0x7d   : > { %323 = vmatmul.mubr.f32.vlgmr.msra.gmra.mxu0 %v1149_v33 }
  0x7e   : > { %328 = vmatprep.mubr.f32.mxu0 %v970_v0 }
  0x81   : > { %329 = vmatmul.mubr.f32.gmra.mxu0 %v1154_v34 }
 0x13d   : > { %v324_v44 = vpop.f32.mrf.mxu0 }
 0x13e   : > { %v339_v45 = vadd.f32 %v338_v41, %v324_v44 }
 0x13f   : > { %v326_v46 = vpop.f32.mrf.mxu0 }
 0x140   : > { %v345_v47 = vadd.f32 %v344_v42, %v326_v46  ;;  %v491_v48 = vmul.f32 %v490_v43, %v339_v45 }
 0x141   : > { %v330_v49 = vpop.f32.mrf.mxu0 }
 0x142   : > { %v340_v50 = vadd.f32 %v338_v41, %v330_v49  ;;  %493 = vadd.xlane.f32.xlu0 %v491_v48  ;;  %705 = vmatpush3.xpose.msra.mxu1 %v345_v47 }
 0x143   : > { %v332_v51 = vpop.f32.mrf.mxu0  ;;  %709 = vmatprep.subr.mxu1 %v970_v0 }
 0x144   : > { %v346_v52 = vadd.f32 %v344_v42, %v332_v51  ;;  %v492_v53 = vmul.f32 %v490_v43, %v340_v50 }
 0x145   : > { %707 = vmatmul.mubr.f32.vlgmr.msra.gmra.mxu1 %v339_v45  ;;  %v563_v45 = vstv %s692_s25 }
 0x146   : > { %495 = vadd.xlane.f32.xlu0 %v492_v53  ;;  %710 = vmatpush3.xpose.msra.mxu1 %v346_v52  ;;  %vm564_vm4 = vcmp.eq.s32.totalorder %v1172_v54, %v563_v45 }
 0x147   : > { %711 = vmatprep.mubr.msk.f32.mxu1 %vm971_vm0, %v970_v0 }
 0x149   : > { %712 = vmatmul.mubr.f32.vlgmr.msra.gmra.mxu1 %v340_v50 }
 0x1cb   : > { %v494_v63 = vpop.xlane.xlu0 %493 }
 0x1cf   : > { %v496_v3 = vpop.xlane.xlu0 %495 }
 0x205   : > { %v413_v55 = vpop.f32.mrf.mxu1 }
 0x206   : > { %v502_v56 = vsel %vm501_vm1, %v413_v55, -1e+30 }
 0x207   : > { %v708_v57 = vpop.f32.mrf.mxu1  ;;  %v505_v58 = vsel %vm504_vm2, %v502_v56, -inf }
 0x208   : > { %506 = vmax.xlane.f32.xlu1 %v505_v58 }
 0x209   : > { %v483_v59 = vpop.f32.mrf.mxu1 }
 0x20a   : > { %v503_v60 = vsel %vm501_vm1, %v483_v59, -1e+30 }
 0x20b   : > { %v713_v61 = vpop.f32.mrf.mxu1  ;;  %v508_v62 = vsel %vm504_vm2, %v503_v60, -inf }
 0x20c   : > { %509 = vmax.xlane.f32.xlu1 %v508_v62 }
 0x291   : > { %v507_v0 = vpop.xlane.xlu1 %506 }
 0x292   : > { %v511_v1 = vmax.f32 %v507_v0, %v494_v63 }
 0x294   : > { %v513_v2 = vsub.f32 %v502_v56, %v511_v1  ;;  %v519_v13 = vsub.f32 %v494_v63, %v511_v1 }
 0x295   : > { %v510_v4 = vpop.xlane.xlu1 %509 }
 0x296   : > { %v515_v5 = vmul.f32 1.442695, %v513_v2  ;;  %v512_v6 = vmax.f32 %v510_v4, %v496_v3  ;;  %v521_v14 = vmul.f32 1.442695, %v519_v13 }
 0x298   : > { %790 = vpow2.f32 %v515_v5  ;;  %v514_v7 = vsub.f32 %v503_v60, %v512_v6  ;;  %v520_v15 = vsub.f32 %v496_v3, %v512_v6 }
 0x29a   : > { %v517_v8 = vmul.f32 1.442695, %v514_v7  ;;  %v523_v16 = vmul.f32 1.442695, %v520_v15 }
 0x29c   : > { %792 = vpow2.f32 %v517_v8 }
 0x29d   : > { %794 = vpow2.f32 %v521_v14 }
 0x29e   : > { %796 = vpow2.f32 %v523_v16 }
 0x2a5   : > { %v791_v9 = vpop.eup %790 }
 0x2a6   : > { %v525_v10 = vsel %vm504_vm2, %v791_v9, 0.0 }
 0x2a7   : > { %526 = vadd.xlane.f32.xlu0 %v525_v10 }
 0x2a9   : > { %v793_v11 = vpop.eup %792 }
 0x2aa   : > { %v528_v12 = vsel %vm504_vm2, %v793_v11, 0.0  ;;  %v795_v17 = vpop.eup %794 }
 0x2ab   : > { %529 = vadd.xlane.f32.xlu1 %v528_v12  ;;  %v797_v21 = vpop.eup %796  ;;  %v545_v28 = vmul.f32 %v795_v17, %v544_v26 }
 0x2ac   : > { %v546_v37 = vmul.f32 %v797_v21, %v544_v26 }
 0x330   : > { %v527_v18 = vpop.xlane.xlu0 %526 }
 0x331   : > { %v531_v19 = vadd.f32 %v795_v17, %v527_v18  ;;  %v539_v27 = vmul.f32 %v538_v25, %v527_v18 }
 0x333   : > { %798 = vrcp.f32 %v531_v19  ;;  %v547_v29 = vadd.f32 %v545_v28, %v539_v27 }
 0x334   : > { %v530_v22 = vpop.xlane.xlu1 %529 }
 0x335   : > { %v532_v24 = vadd.f32 %v797_v21, %v530_v22  ;;  %v540_v30 = vmul.f32 %v538_v25, %v530_v22 }
 0x337   : > { %800 = vrcp.f32 %v532_v24  ;;  %v548_v36 = vadd.f32 %v546_v37, %v540_v30 }
 0x340   : > { %v799_v32 = vpop.eup %798 }
 0x341   : > { %v549_v35 = vmul.f32 %v799_v32, %v547_v29 }
 0x343   : > { %v551_v40 = vadd.f32 %v549_v35, %v1149_v33 }
 0x344   : > { %v801_v41 = vpop.eup %800 }
 0x345   : > { %v550_v38 = vmul.f32 %v801_v41, %v548_v36  ;;  %v557_v42 = vsel %vm1185_vm3, %v551_v40, 0.0 }
 0x346   : > { %559 = vadd.xlane.f32.xlu0 %v557_v42 }
 0x347   : > { %v552_v43 = vadd.f32 %v550_v38, %v1154_v34 }
 0x349   : > { %v558_v44 = vsel %vm1185_vm3, %v552_v43, 0.0 }
 0x34a   : > { %561 = vadd.xlane.f32.xlu1 %v558_v44 }
 0x3cf   : > { %v560_v46 = vpop.xlane.xlu0 %559 }
 0x3d0   : > { %v565_v33 = vadd.f32 %v560_v46, %v551_v40 }
 0x3d2   : > { %v567_v47 = vsel %vm564_vm4, %v565_v33, %v551_v40 }
 0x3d3   : > { %v569_v34 = vsel %vm1185_vm3, 0.0, %v567_v47  ;;  %v562_v48 = vpop.xlane.xlu1 %561 }
 0x3d4   : > { %571 = vst [vmem:[%s220_s30] sm:$0xff] %v569_v34  ;;  %v566_v49 = vadd.f32 %v562_v48, %v552_v43 }
 0x3d6   : > { %v568_v50 = vsel %vm564_vm4, %v566_v49, %v552_v43 }
 0x3d7   : > { %v570_v51 = vsel %vm1185_vm3, 0.0, %v568_v50 }
 0x3d8   : > { %572 = vst [vmem:[%s220_s30 + $0x8] sm:$0xff] %v570_v51 }
 0x3d9   : > { %903 = shalt.err (!%p900_p9)
}
 0x3da   : > { %s904_s29 = scalar_lea.hbm %s1206_s15, 256  ;;  %s908_s11 = scalar_lea.hbm %s1255_s4, 512 }
 0x3db   : > { %p905_p13 = scmp.ne.s32.totalorder %s1206_s15, %s904_s29  ;;  %p909_p4 = scmp.lt.s32.totalorder %s1206_s15, %s1255_s4 }
 0x3dc   : > { %p910_p8 = scmp.lt.s32.totalorder %s908_s11, %s904_s29 }
 0x3dd   : > { %p906_p5 = pnand %p905_p13, %p1273_p10 }
 0x3de   : > { %p911_p3 = por %p910_p8, %p909_p4 }
 0x3df   : > { %p907_p0 = pneg %p906_p5 }
 0x3e1   : > { %p912_p11 = pnand %p911_p3, %p907_p0 }
 0x3e3   : > { %915 = shalt.err (!%p912_p11)
}
 0x3e4   : > { %s973_s25 = smov 128   ;;  %s974_s30 = smov 8  }
 0x3e5   : > { %724 = dma.vmem_to_hbm [thread:$0]  (%p1273_p10), %s1201_s6, 256, %s1206_s15, %s574_s0, %s973_s25, %s973_s25, %s974_s30  }
 0x3e6 PF: > { %s602_s7 = sand.u32 1, %s948_s18   ;;  %p1274_p1 = scmp.ne.s32.totalorder %s1261_s24, 0 }
 0x3e7   : > { %p1275_p2 = scmp.ge.s32.totalorder %s960_s21, 2  ;;  %s603_s8 = scalar_lea.sflag [#allocation6], %s602_s7 }
 0x3e9   : > { %p738_p6 = pnand %p1275_p2, %p1274_p1 }
 0x3eb   : > { %p739_p12 = pneg %p738_p6 }
 0x3ed   : > { %943 = dma.done.wait (%p739_p12), %s603_s8, 256  }
 0x3ee   : > { %945 = vsyncadd (%p739_p12), %s603_s8, 4294967040  ;;  %p22_p7 = scmp.ge.s32.totalorder %s1075_s13, 4   ;;  %s1276_s18 = smov %s952_s19 }
 0x3ef   : > { %s1277_s19 = smov %s956_s20  ;;  %s1278_s20 = smov %s1091_s17 }
 0x3f0   : > { %s1279_s21 = smov %s1075_s13  ;;  %24 = sbr.rel (!%p22_p7) target bundleno = 11 (0xb), region = 85 }
 0x3f5   :  { %608 = vsyncpa [#allocation5], 1 }
 0x3f6   :  { %610 = vsyncpa [#allocation5 + $0x1], 1 }
 0x3f7   :  { %611 = vsyncpa [#allocation8], 1 }
 0x3f8   :  { %612 = vsyncpa [#allocation6], 1 }
 0x3f9   :  { %614 = vsyncpa [#allocation6 + $0x1], 1 }

</bundles_post_ra>
